<compile_context>
chip_gen: v7x
topology: tpu7x:2x2x1
jax: 0.10.0
libtpu: 0.0.40
codegen_flags: <defaults>
</compile_context>

<pallas_src>
import jax
import jax.numpy as jnp
from jax import lax
from jax.experimental import pallas as pl
from jax.experimental.pallas import tpu as pltpu

BN_EPS = 1e-5
LEAK = 0.2  # default LeakyReLU slope inside Gatedconv2dWithActivation


# ----------------------------------------------------------------------------- helpers

def _tap_offsets(wp):
    # k = dy*3 + dx ; lane offset of tap (dy, dx) in flattened padded-plane coords
    return [(dy - 1) * wp + (dx - 1) for dy in range(3) for dx in range(3)]


def _tapify(w):
    # (O, Cin, 3, 3) -> (9, O, Cin), tap index k = dy*3 + dx
    o, cin, _, _ = w.shape
    return jnp.transpose(w.astype(jnp.float32), (2, 3, 0, 1)).reshape(9, o, cin)


def _blockdiag_taps(w, n_batch):
    # -> (n_batch*O, 9*n_batch*Cin); row (n,o), col (k, n', c); zero unless n == n'.
    o, cin, _, _ = w.shape
    wt = _tapify(w)                                            # (9, O, Cin)
    eye = jnp.eye(n_batch, dtype=jnp.float32)
    wbd = jax.vmap(lambda wk: jnp.kron(eye, wk))(wt)           # (9, N*O, N*Cin)
    return jnp.transpose(wbd, (1, 0, 2)).reshape(n_batch * o, 9 * n_batch * cin)


# ----------------------------------------------------------------------------- kernels

def _make_gated_bn_kernel(n, c, h, w, e):
    """Gated conv (conv + mask conv fused in one matmul) -> LeakyReLU*sigmoid -> BN1."""
    hp, wp = h + 2, w + 2
    p = hp * wp
    offs = _tap_offsets(wp)
    nc = n * c
    cnt = float(n * h * w)

    def kernel(xg_ref, wcm_ref, bcm_ref, g1_ref, bt1_ref, mask_ref, h_ref):
        xg = xg_ref[...]                                        # (NC, LG) guarded planes
        # im2col: 9 lane-shifted copies, concatenated on the contraction (sublane) axis.
        taps = [xg[:, e + off:e + off + p] for off in offs]
        pm = jnp.concatenate(taps, axis=0)                      # (9*NC, P)
        # single MXU matmul for conv + mask_conv (batch handled by block-diag weight)
        r = jnp.dot(wcm_ref[...], pm, preferred_element_type=jnp.float32)
        r = r + bcm_ref[...]                                    # (2*NC, P)
        a = r[:nc]                                              # gated-conv branch
        mb = r[nc:]                                             # mask branch
        g = jnp.where(a > 0, a, LEAK * a) * (1.0 / (1.0 + jnp.exp(-mb)))

        # BatchNorm2d (training-mode batch stats), one-pass masked sum / sumsq,
        # folded into a single per-channel scale/shift.
        g3 = g.reshape(n, c, p)
        msk = mask_ref[...].reshape(1, 1, p)
        gm = g3 * msk
        s = jnp.sum(jnp.sum(gm, axis=2, keepdims=True), axis=0, keepdims=True)
        ss = jnp.sum(jnp.sum(gm * gm, axis=2, keepdims=True), axis=0, keepdims=True)
        mean = s / cnt
        var = jnp.maximum(ss / cnt - mean * mean, 0.0)
        scale = g1_ref[...] * lax.rsqrt(var + BN_EPS)
        shift = bt1_ref[...] - mean * scale
        # mask again so the pad ring is exactly zero -> serves as conv2's zero padding
        h3 = (g3 * scale + shift) * msk
        h_ref[...] = h3.reshape(nc, p)                          # lane-dense store (324 lanes)

    return kernel


def _make_conv_bn_res_kernel(n, c, h, w, e):
    """Conv2d(3x3) -> BN2 -> residual add (conv bias dropped: cancelled by BN)."""
    hp, wp = h + 2, w + 2
    p = hp * wp
    offs = _tap_offsets(wp)
    nc = n * c
    cnt = float(n * h * w)

    def kernel(hg_ref, xg_ref, w2_ref, g2_ref, bt2_ref, mask_ref, o_ref):
        hg = hg_ref[...]                                        # (NC, LG) guarded BN1 output
        taps = [hg[:, e + off:e + off + p] for off in offs]
        pm = jnp.concatenate(taps, axis=0)                      # (9*NC, P)
        c2 = jnp.dot(w2_ref[...], pm, preferred_element_type=jnp.float32)  # (NC, P)

        c3 = c2.reshape(n, c, p)
        msk = mask_ref[...].reshape(1, 1, p)
        cm = c3 * msk
        s = jnp.sum(jnp.sum(cm, axis=2, keepdims=True), axis=0, keepdims=True)
        ss = jnp.sum(jnp.sum(cm * cm, axis=2, keepdims=True), axis=0, keepdims=True)
        mean = s / cnt
        var = jnp.maximum(ss / cnt - mean * mean, 0.0)
        scale = g2_ref[...] * lax.rsqrt(var + BN_EPS)
        shift = bt2_ref[...] - mean * scale
        d3 = c3 * scale + shift

        x3 = xg_ref[...][:, e:e + p].reshape(n, c, p)           # residual input (padded plane)
        o_ref[...] = (x3 + d3).reshape(nc, p)                   # lane-dense store

    return kernel


# ----------------------------------------------------------------------------- wrapper

def gate_resnet_block(x, params):
    """PyTorch-equivalent Gate_ResnetBlock forward: x (N, dim, H, W) -> (N, dim, H, W)."""
    (w1, b1, wm, bm, g1, bt1, w2, b2, g2, bt2) = params   # b2 unused: cancelled by BN2
    del b2

    n, c, h, w = x.shape
    hp, wp = h + 2, w + 2
    p = hp * wp
    e = wp + 1                                   # left guard >= max |tap offset|
    lg = ((e + p + wp + 1 + 127) // 128) * 128   # lane width (multiple of 128), right guard too

    f32 = jnp.float32
    x = x.astype(f32)

    # zero-pad spatially (padding=1) and embed each (n, c) plane, flattened, with a guard
    # ring of zeros inside a lane-aligned row.  NCHW flattening -> no transposes anywhere.
    xsp = jnp.pad(x, ((0, 0), (0, 0), (1, 1), (1, 1))).reshape(n * c, p)
    xg = jnp.pad(xsp, ((0, 0), (e, lg - e - p)))

    # valid-pixel mask on the flattened padded plane
    ii = jnp.arange(hp)[:, None]
    jj = jnp.arange(wp)[None, :]
    mask = (((ii >= 1) & (ii <= h)) & ((jj >= 1) & (jj <= w))).astype(f32).reshape(1, p)

    # conv + mask_conv fused into one block-diagonal (over batch) weight; conv2 separate.
    wcm = jnp.concatenate([_blockdiag_taps(w1, n), _blockdiag_taps(wm, n)], axis=0)
    bcm = jnp.concatenate([jnp.tile(b1.astype(f32), n),
                           jnp.tile(bm.astype(f32), n)]).reshape(2 * n * c, 1)
    w2bd = _blockdiag_taps(w2, n)

    g1v = g1.astype(f32).reshape(1, c, 1)
    bt1v = bt1.astype(f32).reshape(1, c, 1)
    g2v = g2.astype(f32).reshape(1, c, 1)
    bt2v = bt2.astype(f32).reshape(1, c, 1)

    vmem = pl.BlockSpec(memory_space=pltpu.MemorySpace.VMEM)

    # kernel 1: gated conv + BN1 (output h is zero on the pad ring)
    h_act = pl.pallas_call(
        _make_gated_bn_kernel(n, c, h, w, e),
        out_shape=jax.ShapeDtypeStruct((n * c, p), f32),
        in_specs=[vmem] * 6,
        out_specs=vmem,
    )(xg, wcm, bcm, g1v, bt1v, mask)

    # re-embed with the guard ring (tiny, ~10 KB pad on HBM)
    hg = jnp.pad(h_act, ((0, 0), (e, lg - e - p)))

    # kernel 2: conv2 + BN2 + residual
    out_flat = pl.pallas_call(
        _make_conv_bn_res_kernel(n, c, h, w, e),
        out_shape=jax.ShapeDtypeStruct((n * c, p), f32),
        in_specs=[vmem] * 6,
        out_specs=vmem,
    )(hg, xg, w2bd, g2v, bt2v, mask)

    # free reshape (same memory order as NCHW) + interior slice of the padded plane
    return out_flat.reshape(n, c, hp, wp)[:, :, 1:h + 1, 1:w + 1]


# ----------------------------------------------------------------------------- reference

def gate_resnet_block_reference(x, params):
    """Pure-JAX reference with exact PyTorch forward semantics (incl. conv2 bias)."""
    (w1, b1, wm, bm, g1, bt1, w2, b2, g2, bt2) = params
    f32 = jnp.float32
    x = x.astype(f32)

    def conv(inp, wgt, bias):
        y = lax.conv_general_dilated(inp, wgt.astype(f32), (1, 1), ((1, 1), (1, 1)),
                                     dimension_numbers=("NCHW", "OIHW", "NCHW"))
        return y + bias.astype(f32).reshape(1, -1, 1, 1)

    def bn(y, gamma, beta):
        mean = jnp.mean(y, axis=(0, 2, 3), keepdims=True)
        var = jnp.mean((y - mean) ** 2, axis=(0, 2, 3), keepdims=True)
        yh = (y - mean) * lax.rsqrt(var + BN_EPS)
        return yh * gamma.astype(f32).reshape(1, -1, 1, 1) + beta.astype(f32).reshape(1, -1, 1, 1)

    a = conv(x, w1, b1)
    m = conv(x, wm, bm)
    gated = jnp.where(a > 0, a, LEAK * a) * jax.nn.sigmoid(m)
    h = bn(gated, g1, bt1)
    c2 = conv(h, w2, b2)
    d = bn(c2, g2, bt2)
    return x + d


# ----------------------------------------------------------------------------- main

if __name__ == "__main__":
    # Gate_ResnetBlock(dim=4, padding_type='zero', norm_layer=BatchNorm2d, use_dropout=False)
    N, C, H, W = 2, 4, 16, 16

    key = jax.random.PRNGKey(0)
    ks = jax.random.split(key, 11)
    fan_in = C * 3 * 3

    def kaiming(k, shape):
        return jax.random.normal(k, shape, dtype=jnp.float32) * jnp.sqrt(2.0 / fan_in)

    x = jax.random.normal(ks[0], (N, C, H, W), dtype=jnp.float32)
    w1 = kaiming(ks[1], (C, C, 3, 3))
    b1 = 0.1 * jax.random.normal(ks[2], (C,), dtype=jnp.float32)
    wm = kaiming(ks[3], (C, C, 3, 3))
    bm = 0.1 * jax.random.normal(ks[4], (C,), dtype=jnp.float32)
    w2 = kaiming(ks[5], (C, C, 3, 3))
    b2 = 0.1 * jax.random.normal(ks[6], (C,), dtype=jnp.float32)
    g1 = 1.0 + 0.1 * jax.random.normal(ks[7], (C,), dtype=jnp.float32)
    bt1 = 0.1 * jax.random.normal(ks[8], (C,), dtype=jnp.float32)
    g2 = 1.0 + 0.1 * jax.random.normal(ks[9], (C,), dtype=jnp.float32)
    bt2 = 0.1 * jax.random.normal(ks[10], (C,), dtype=jnp.float32)

    params = (w1, b1, wm, bm, g1, bt1, w2, b2, g2, bt2)

    out = jax.block_until_ready(gate_resnet_block(x, params))
    ref = jax.block_until_ready(gate_resnet_block_reference(x, params))

    assert out.shape == (N, C, H, W)
    assert jnp.allclose(out, ref, atol=5e-4, rtol=5e-4), (
        "mismatch vs reference: max abs err = %e" % float(jnp.max(jnp.abs(out - ref))))

    print("KERNEL_OK")
</pallas_src>

<mosaic_0001>
module attributes {stable_mosaic.version = 11 : i64} {
  func.func @kernel(%arg0: memref<8x384xf32, #tpu.memory_space<vmem>>, %arg1: memref<16x72xf32, #tpu.memory_space<vmem>>, %arg2: memref<16x1xf32, #tpu.memory_space<vmem>>, %arg3: memref<1x4x1xf32, #tpu.memory_space<vmem>>, %arg4: memref<1x4x1xf32, #tpu.memory_space<vmem>>, %arg5: memref<1x324xf32, #tpu.memory_space<vmem>>, %arg6: memref<8x324xf32, #tpu.memory_space<vmem>>) attributes {dimension_semantics = [], scalar_prefetch = 0 : i64, scratch_operands = 0 : i64, tpu.core_type = #tpu.core_type<tc>} {
    %c0 = arith.constant 0 : index
    %c0_0 = arith.constant 0 : index
    %0 = vector.load %arg0[%c0, %c0_0] : memref<8x384xf32, #tpu.memory_space<vmem>>, vector<8x384xf32>
    %1 = vector.extract_strided_slice %0 {offsets = [0, 0], sizes = [8, 324], strides = [1, 1]} : vector<8x384xf32> to vector<8x324xf32>
    %2 = vector.extract_strided_slice %0 {offsets = [0, 1], sizes = [8, 324], strides = [1, 1]} : vector<8x384xf32> to vector<8x324xf32>
    %3 = vector.extract_strided_slice %0 {offsets = [0, 2], sizes = [8, 324], strides = [1, 1]} : vector<8x384xf32> to vector<8x324xf32>
    %4 = vector.extract_strided_slice %0 {offsets = [0, 18], sizes = [8, 324], strides = [1, 1]} : vector<8x384xf32> to vector<8x324xf32>
    %5 = vector.extract_strided_slice %0 {offsets = [0, 19], sizes = [8, 324], strides = [1, 1]} : vector<8x384xf32> to vector<8x324xf32>
    %6 = vector.extract_strided_slice %0 {offsets = [0, 20], sizes = [8, 324], strides = [1, 1]} : vector<8x384xf32> to vector<8x324xf32>
    %7 = vector.extract_strided_slice %0 {offsets = [0, 36], sizes = [8, 324], strides = [1, 1]} : vector<8x384xf32> to vector<8x324xf32>
    %8 = vector.extract_strided_slice %0 {offsets = [0, 37], sizes = [8, 324], strides = [1, 1]} : vector<8x384xf32> to vector<8x324xf32>
    %9 = vector.extract_strided_slice %0 {offsets = [0, 38], sizes = [8, 324], strides = [1, 1]} : vector<8x384xf32> to vector<8x324xf32>
    %10 = tpu.concatenate %1, %2, %3, %4, %5, %6, %7, %8, %9 in 0 : vector<8x324xf32>, vector<8x324xf32>, vector<8x324xf32>, vector<8x324xf32>, vector<8x324xf32>, vector<8x324xf32>, vector<8x324xf32>, vector<8x324xf32>, vector<8x324xf32> -> vector<72x324xf32>
    %c0_1 = arith.constant 0 : index
    %c0_2 = arith.constant 0 : index
    %11 = vector.load %arg1[%c0_1, %c0_2] : memref<16x72xf32, #tpu.memory_space<vmem>>, vector<16x72xf32>
    %cst = arith.constant dense<0.000000e+00> : vector<16x324xf32>
    %12 = tpu.matmul %11, %10, %cst {dimension_numbers = #tpu.dot_dimension_numbers<[1], [0], [0], [1], [0, 0, 1, 1], [], []>} : vector<16x72xf32>, vector<72x324xf32>, vector<16x324xf32> -> vector<16x324xf32>
    %c0_3 = arith.constant 0 : index
    %c0_4 = arith.constant 0 : index
    %13 = vector.load %arg2[%c0_3, %c0_4] : memref<16x1xf32, #tpu.memory_space<vmem>>, vector<16x1xf32>
    %14 = vector.broadcast %13 : vector<16x1xf32> to vector<16x324xf32>
    %15 = arith.addf %12, %14 : vector<16x324xf32>
    %16 = vector.extract_strided_slice %15 {offsets = [0, 0], sizes = [8, 324], strides = [1, 1]} : vector<16x324xf32> to vector<8x324xf32>
    %17 = vector.extract_strided_slice %15 {offsets = [8, 0], sizes = [8, 324], strides = [1, 1]} : vector<16x324xf32> to vector<8x324xf32>
    %cst_5 = arith.constant 0.000000e+00 : f32
    %18 = vector.broadcast %cst_5 : f32 to vector<8x324xf32>
    %19 = arith.cmpf ogt, %16, %18 : vector<8x324xf32>
    %cst_6 = arith.constant 2.000000e-01 : f32
    %20 = vector.broadcast %cst_6 : f32 to vector<8x324xf32>
    %21 = arith.mulf %20, %16 : vector<8x324xf32>
    %22 = arith.select %19, %16, %21 : vector<8x324xi1>, vector<8x324xf32>
    %cst_7 = arith.constant 0.000000e+00 : f32
    %23 = vector.broadcast %cst_7 : f32 to vector<8x324xf32>
    %24 = arith.subf %23, %17 : vector<8x324xf32>
    %25 = math.exp %24 : vector<8x324xf32>
    %cst_8 = arith.constant 1.000000e+00 : f32
    %26 = vector.broadcast %cst_8 : f32 to vector<8x324xf32>
    %27 = arith.addf %26, %25 : vector<8x324xf32>
    %cst_9 = arith.constant 1.000000e+00 : f32
    %28 = vector.broadcast %cst_9 : f32 to vector<8x324xf32>
    %29 = arith.divf %28, %27 : vector<8x324xf32>
    %30 = arith.mulf %22, %29 : vector<8x324xf32>
    %31 = vector.shape_cast %30 : vector<8x324xf32> to vector<2x4x324xf32>
    %c0_10 = arith.constant 0 : index
    %c0_11 = arith.constant 0 : index
    %32 = vector.load %arg5[%c0_10, %c0_11] : memref<1x324xf32, #tpu.memory_space<vmem>>, vector<1x324xf32>
    %33 = vector.shape_cast %32 : vector<1x324xf32> to vector<1x1x324xf32>
    %34 = vector.broadcast %33 : vector<1x1x324xf32> to vector<2x4x324xf32>
    %35 = arith.mulf %31, %34 : vector<2x4x324xf32>
    %cst_12 = arith.constant dense<0.000000e+00> : vector<2x4xf32>
    %36 = vector.multi_reduction <add>, %35, %cst_12 [2] : vector<2x4x324xf32> to vector<2x4xf32>
    %37 = vector.shape_cast %36 : vector<2x4xf32> to vector<2x4x1xf32>
    %cst_13 = arith.constant dense<0.000000e+00> : vector<4x1xf32>
    %38 = vector.multi_reduction <add>, %37, %cst_13 [0] : vector<2x4x1xf32> to vector<4x1xf32>
    %39 = vector.shape_cast %38 : vector<4x1xf32> to vector<1x4x1xf32>
    %40 = arith.mulf %35, %35 : vector<2x4x324xf32>
    %cst_14 = arith.constant dense<0.000000e+00> : vector<2x4xf32>
    %41 = vector.multi_reduction <add>, %40, %cst_14 [2] : vector<2x4x324xf32> to vector<2x4xf32>
    %42 = vector.shape_cast %41 : vector<2x4xf32> to vector<2x4x1xf32>
    %cst_15 = arith.constant dense<0.000000e+00> : vector<4x1xf32>
    %43 = vector.multi_reduction <add>, %42, %cst_15 [0] : vector<2x4x1xf32> to vector<4x1xf32>
    %44 = vector.shape_cast %43 : vector<4x1xf32> to vector<1x4x1xf32>
    %cst_16 = arith.constant 5.120000e+02 : f32
    %45 = vector.broadcast %cst_16 : f32 to vector<1x4x1xf32>
    %46 = arith.divf %39, %45 : vector<1x4x1xf32>
    %cst_17 = arith.constant 5.120000e+02 : f32
    %47 = vector.broadcast %cst_17 : f32 to vector<1x4x1xf32>
    %48 = arith.divf %44, %47 : vector<1x4x1xf32>
    %49 = arith.mulf %46, %46 : vector<1x4x1xf32>
    %50 = arith.subf %48, %49 : vector<1x4x1xf32>
    %cst_18 = arith.constant 0.000000e+00 : f32
    %51 = vector.broadcast %cst_18 : f32 to vector<1x4x1xf32>
    %52 = arith.maximumf %50, %51 : vector<1x4x1xf32>
    %c0_19 = arith.constant 0 : index
    %c0_20 = arith.constant 0 : index
    %c0_21 = arith.constant 0 : index
    %53 = vector.load %arg3[%c0_19, %c0_20, %c0_21] : memref<1x4x1xf32, #tpu.memory_space<vmem>>, vector<1x4x1xf32>
    %cst_22 = arith.constant 9.99999974E-6 : f32
    %54 = vector.broadcast %cst_22 : f32 to vector<1x4x1xf32>
    %55 = arith.addf %52, %54 : vector<1x4x1xf32>
    %56 = math.rsqrt %55 : vector<1x4x1xf32>
    %57 = arith.mulf %53, %56 : vector<1x4x1xf32>
    %c0_23 = arith.constant 0 : index
    %c0_24 = arith.constant 0 : index
    %c0_25 = arith.constant 0 : index
    %58 = vector.load %arg4[%c0_23, %c0_24, %c0_25] : memref<1x4x1xf32, #tpu.memory_space<vmem>>, vector<1x4x1xf32>
    %59 = arith.mulf %46, %57 : vector<1x4x1xf32>
    %60 = arith.subf %58, %59 : vector<1x4x1xf32>
    %61 = vector.broadcast %57 : vector<1x4x1xf32> to vector<2x4x324xf32>
    %62 = arith.mulf %31, %61 : vector<2x4x324xf32>
    %63 = vector.broadcast %60 : vector<1x4x1xf32> to vector<2x4x324xf32>
    %64 = arith.addf %62, %63 : vector<2x4x324xf32>
    %65 = vector.broadcast %33 : vector<1x1x324xf32> to vector<2x4x324xf32>
    %66 = arith.mulf %64, %65 : vector<2x4x324xf32>
    %67 = vector.shape_cast %66 : vector<2x4x324xf32> to vector<8x324xf32>
    %c0_26 = arith.constant 0 : index
    %c0_27 = arith.constant 0 : index
    %68 = vector.load %arg6[%c0_26, %c0_27] : memref<8x324xf32, #tpu.memory_space<vmem>>, vector<8x324xf32>
    tpu.vector_store %arg6[%c0_26, %c0_27], %67 {strides = array<i32>} : memref<8x324xf32, #tpu.memory_space<vmem>>, vector<8x324xf32>,
    return
  }
}

</mosaic_0001>

<bundles_post_ra>
// kernel: tpu_custom_call.1
= control target key start
LH: loop header
LB: loop body
LE: loop exit
PB: predicated region body
PF: predicated region fallthrough
CT: control target
= control target key end

     0   :  { %11 = vsyncpa [#allocation3], 0  ;;  %s849_s0 = inlined_call_operand.vmem [shape: f32[8,384], index: 0, kind: input, shape index: {}]   ;;  %s850_s1 = inlined_call_operand.hbm [shape: f32[16,72], index: 1, kind: input, shape index: {}]   ;;  %s851_s2 = inlined_call_operand.vmem [shape: f32[16,1], index: 2, kind: input, shape index: {}]   ;;  %s852_s3 = inlined_call_operand.vmem [shape: f32[1,4,1], index: 3, kind: input, shape index: {}]   ;;  %s853_s4 = inlined_call_operand.vmem [shape: f32[1,4,1], index: 4, kind: input, shape index: {}]   ;;  %s854_s5 = inlined_call_operand.vmem [shape: f32[1,324], index: 5, kind: input, shape index: {}]   ;;  %s855_s6 = inlined_call_operand.hbm [shape: f32[8,324], index: 6, kind: output, shape index: {}]  }
   0x1   :  { %12 = vsyncpa [#allocation4], 0  ;;  %s685_s21 = smov [#allocation2]   ;;  %s637_s25 = scalar_lea.hbm %s850_s1, 256 }
   0x2   :  { %s20_s22 = sshll.u32 %s685_s21, 4  ;;  %p638_p0 = scmp.ne.s32.totalorder %s850_s1, %s637_s25  ;;  %s21_s22 = int_to_ptr.vmem [resolvable:$true] %s20_s22 }
   0x3   :  { %p641_p1 = scmp.lt.u32.totalorder %s637_s25, %s850_s1 }
   0x5   :  { %p643_p2 = pnand %p641_p1, %p638_p0 }
   0x7   :  { %646 = shalt.err (!%p643_p2)
}
   0x8   :  { %s647_s30 = scalar_lea.vmem %s21_s22, 256  ;;  %p652_p4 = scmp.lt.s32.totalorder %s21_s22, %s21_s22 }
   0x9   :  { %p648_p3 = scmp.ne.s32.totalorder %s21_s22, %s647_s30  ;;  %p653_p5 = scmp.lt.s32.totalorder %s647_s30, %s647_s30 }
   0xb   :  { %p654_p6 = por %p653_p5, %p652_p4 }
   0xd   :  { %p655_p7 = pnand %p654_p6, %p648_p3 }
   0xf   :  { %658 = shalt.err (!%p655_p7)
}
  0x10   :  { %s686_s7 = smov 128   ;;  %s687_s8 = smov 8  }
  0x11   :  { %26 = dma.hbm_to_vmem [thread:$0]  %s850_s1, 256, %s21_s22, [#allocation3], %s686_s7, %s686_s7, %s687_s8  }
  0x12   :  { %681 = dma.done.wait [#allocation3], 256  }
  0x13   :  { %682 = vsyncadd [#allocation3], 4294967040  ;;  %v39_v0 = vld [vmem:[%s849_s0 + $0x8] sm:$0xff]  ;;  %v40_v1 = vld [vmem:[%s849_s0 + $0x10] sm:$0xff]  ;;  %s688_s15 = smov 126   ;;  %s689_s16 = smov 127  }
  0x14   :  { %v591_v2 = vpack.i.bf16 %v40_v1, %v39_v0  ;;  %v38_v3 = vld [vmem:[%s849_s0] sm:$0xff]  ;;  %s690_s1 = smov 110   ;;  %s691_s19 = smov 108   ;;  %vm154_vm0 = vcmask 588800   ;;  %v695_v5 = vmov 0.0   ;;  %v696_v6 = vmov 0  }
  0x15   :  { %s692_s20 = smov 109   ;;  %v756_v4 = vld [vmem:[#allocation2] sm:$0xff]  ;;  %s693_s21 = smov 91   ;;  %225 = vmatprep.mubr.f32.mxu0 %v695_v5  ;;  %621 = vset.pattern.permute.xlu1 %v696_v6  ;;  %v143_v7 = vld [vmem:[%s851_s2 + $0x8] sm:$0xff]  ;;  %vm50_vm1 = vcmask 1039360   ;;  %vm74_vm2 = vcmask 900096  }
  0x16   :  { %592 = vrot.lane.b32.xlu1 %v591_v2, %s688_s15  ;;  %587 = vrot.lane.b32.xlu0 %v591_v2, %s689_s16  ;;  %s694_s0 = smov 92   ;;  %s697_s22 = smov 90   ;;  %v142_v8 = vld [vmem:[%s851_s2] sm:$0xff]  ;;  %vm62_vm3 = vcmask 1031168   ;;  %vm98_vm4 = vcmask 883712   ;;  %vm86_vm5 = vcmask 891904  }
  0x17   :  { %536 = vmatprep.mubr.msk.f32.mxu1 %vm154_vm0, %v756_v4  ;;  %622 = vset.pattern.permute.xlu0 %v696_v6  ;;  %vm122_vm6 = vcmask 744448   ;;  %vm110_vm7 = vcmask 752640   ;;  %vm134_vm8 = vcmask 736256   ;;  %vm379_vm12 = vcmask 1043456  }
  0x18   :  { %vm383_vm13 = vcmask 551936   ;;  %vm486_vm14 = vcmask 556032  }
  0x1a   :  { %597 = vrot.lane.b32.xlu1 %v591_v2, %s690_s1  ;;  %44 = vrot.lane.b32.xlu0 %v38_v3, %s689_s16 }
  0x1e   :  { %68 = vrot.lane.b32.xlu1 %v38_v3, %s690_s1  ;;  %56 = vrot.lane.b32.xlu0 %v38_v3, %s688_s15 }
  0x22   :  { %607 = vrot.lane.b32.xlu1 %v591_v2, %s691_s19  ;;  %602 = vrot.lane.b32.xlu0 %v591_v2, %s692_s20 }
  0x26   :  { %92 = vrot.lane.b32.xlu1 %v38_v3, %s691_s19  ;;  %80 = vrot.lane.b32.xlu0 %v38_v3, %s692_s20 }
  0x2a   :  { %617 = vrot.lane.b32.xlu1 %v591_v2, %s693_s21  ;;  %612 = vrot.lane.b32.xlu0 %v591_v2, %s694_s0 }
  0x2e   :  { %116 = vrot.lane.b32.xlu1 %v38_v3, %s693_s21  ;;  %104 = vrot.lane.b32.xlu0 %v38_v3, %s694_s0 }
  0x32   :  { %132 = vrot.lane.b32.xlu1 %v40_v1, %s697_s22  ;;  %130 = vrot.lane.b32.xlu0 %v39_v0, %s697_s22 }
  0x36   :  { %128 = vrot.lane.b32.xlu0 %v38_v3, %s697_s22  ;;  %151 = vperm.xlu1 %621, %v143_v7  }
  0x3a   :  { %146 = vperm.xlu0 %622, %v142_v8  }
  0x88   :  { %v593_v9 = vpop.permute.xlu1 %592  ;;  %v588_v10 = vpop.permute.xlu0 %587 }
  0x89   :  { %v590_v11 = vunpack.i.h.bf16 %v588_v10  ;;  %v589_v12 = vunpack.i.l.bf16 %v588_v10  ;;  %v595_v13 = vunpack.i.h.bf16 %v593_v9  ;;  %v594_v14 = vunpack.i.l.bf16 %v593_v9 }
  0x8b   :  { %v555_v15 = vpack.c.bf16 %v590_v11, %v40_v1  ;;  %v52_v16 = vsel %vm50_vm1, %v589_v12, %v590_v11  ;;  %v64_v25 = vsel %vm62_vm3, %v594_v14, %v595_v13  ;;  %v141_v1 = vld [vmem:[#allocation2 + $0x8] sm:$0xff] }
  0x8c   :  { %v598_v17 = vpop.permute.xlu1 %597  ;;  %v45_v18 = vpop.permute.xlu0 %44  ;;  %v539_v19 = vpack.c.bf16 %v52_v16, %v39_v0 }
  0x8d   :  { %v600_v20 = vunpack.i.h.bf16 %v598_v17  ;;  %v599_v21 = vunpack.i.l.bf16 %v598_v17  ;;  %v51_v22 = vsel %vm50_vm1, %v45_v18, %v589_v12  ;;  %556 = vmatprep.subr.bf16.mxu1 %v555_v15 }
  0x8e   :  { %540 = vmatprep.subr.bf16.mxu0 %v539_v19  ;;  %558 = vmatpush3.bf16.msra.mxu1 %v555_v15  ;;  %v541_v23 = vpack.c.bf16 %v51_v22, %v38_v3 }
  0x8f   :  { %v559_v24 = vpack.c.bf16 %v600_v20, %v595_v13  ;;  %v76_v26 = vsel %vm74_vm2, %v599_v21, %v600_v20 }
  0x90   :  { %v69_v27 = vpop.permute.xlu1 %68  ;;  %542 = vmatpush1.bf16.msra.mxu0 %v541_v23  ;;  %v57_v28 = vpop.permute.xlu0 %56  ;;  %v543_v29 = vpack.c.bf16 %v76_v26, %v64_v25 }
  0x91   :  { %v75_v30 = vsel %vm74_vm2, %v69_v27, %v599_v21  ;;  %v63_v31 = vsel %vm62_vm3, %v57_v28, %v594_v14  ;;  %560 = vmatprep.subr.bf16.mxu1 %v559_v24 }
  0x92   :  { %v545_v32 = vpack.c.bf16 %v75_v30, %v63_v31  ;;  %544 = vmatprep.subr.bf16.mxu0 %v543_v29  ;;  %562 = vmatpush3.bf16.msra.mxu1 %v559_v24  ;;  %v354_v29 = vlaneseq }
  0x94   :  { %v608_v33 = vpop.permute.xlu1 %607  ;;  %546 = vmatpush1.bf16.msra.mxu0 %v545_v32  ;;  %v603_v34 = vpop.permute.xlu0 %602 }
  0x95   :  { %v610_v35 = vunpack.i.h.bf16 %v608_v33  ;;  %v609_v36 = vunpack.i.l.bf16 %v608_v33  ;;  %v605_v37 = vunpack.i.h.bf16 %v603_v34  ;;  %v604_v38 = vunpack.i.l.bf16 %v603_v34 }
  0x96   :  { %v776_v34 = vshrl.u32 %v354_v29, 7 }
  0x97   :  { %v563_v39 = vpack.c.bf16 %v610_v35, %v605_v37  ;;  %v88_v40 = vsel %vm86_vm5, %v604_v38, %v605_v37  ;;  %v100_v41 = vsel %vm98_vm4, %v609_v36, %v610_v35 }
  0x98   :  { %v93_v42 = vpop.permute.xlu1 %92  ;;  %v81_v43 = vpop.permute.xlu0 %80  ;;  %v547_v44 = vpack.c.bf16 %v100_v41, %v88_v40  ;;  %v356_v37 = vsub.s32 0, %v776_v34  ;;  %v352_v41 = vld [vmem:[%s854_s5] sm:$0x7] }
  0x99   :  { %v99_v45 = vsel %vm98_vm4, %v93_v42, %v609_v36  ;;  %v87_v46 = vsel %vm86_vm5, %v81_v43, %v604_v38  ;;  %564 = vmatprep.subr.bf16.mxu1 %v563_v39  ;;  %v360_v38 = vsub.s32 1, %v776_v34 }
  0x9a   :  { %v549_v47 = vpack.c.bf16 %v99_v45, %v87_v46  ;;  %548 = vmatprep.subr.bf16.mxu0 %v547_v44  ;;  %566 = vmatpush3.bf16.msra.mxu1 %v563_v39  ;;  %v357_v42 = vrot.slane %v352_v41, %v356_v37  ;;  %v364_v44 = vsub.s32 2, %v776_v34 }
  0x9b   :  { %v361_v43 = vrot.slane %v352_v41, %v360_v38 }
  0x9c   :  { %v618_v48 = vpop.permute.xlu1 %617  ;;  %v613_v49 = vpop.permute.xlu0 %612  ;;  %550 = vmatpush1.bf16.msra.mxu0 %v549_v47 }
  0x9d   :  { %v620_v50 = vunpack.i.h.bf16 %v618_v48  ;;  %v619_v51 = vunpack.i.l.bf16 %v618_v48  ;;  %v615_v52 = vunpack.i.h.bf16 %v613_v49  ;;  %v614_v53 = vunpack.i.l.bf16 %v613_v49 }
  0x9f   :  { %v567_v54 = vpack.c.bf16 %v620_v50, %v615_v52  ;;  %v112_v55 = vsel %vm110_vm7, %v614_v53, %v615_v52  ;;  %v124_v56 = vsel %vm122_vm6, %v619_v51, %v620_v50  ;;  %v788_v52 = vrot.slane %v352_v41, %v364_v44 }
  0xa0   :  { %v117_v57 = vpop.permute.xlu1 %116  ;;  %v105_v58 = vpop.permute.xlu0 %104  ;;  %v551_v59 = vpack.c.bf16 %v124_v56, %v112_v55 }
  0xa1   :  { %v123_v60 = vsel %vm122_vm6, %v117_v57, %v619_v51  ;;  %v111_v61 = vsel %vm110_vm7, %v105_v58, %v614_v53  ;;  %568 = vmatprep.subr.bf16.mxu1 %v567_v54  ;;  %v786_v51 = vcombine.low %v357_v42, %v361_v43  ;;  %v431_v42 = vld [vmem:[%s852_s3] sm:$0xf]  ;;  %s699_s3 = smov [#allocation5]  }
  0xa2   :  { %v553_v62 = vpack.c.bf16 %v123_v60, %v111_v61  ;;  %552 = vmatprep.subr.bf16.mxu0 %v551_v59  ;;  %570 = vmatpush3.bf16.msra.mxu1 %v567_v54 }
  0xa4   :  { %v133_v63 = vpop.permute.xlu1 %132  ;;  %v131_v0 = vpop.permute.xlu0 %130  ;;  %554 = vmatpush1.bf16.msra.mxu0 %v553_v62 }
  0xa5   :  { %534 = vmatprep.subr.mxu1 %v133_v63  ;;  %v136_v2 = vsel %vm134_vm8, %v131_v0, %v133_v63 }
  0xa6   :  { %177 = vmatprep.subr.mxu0 %v136_v2  ;;  %535 = vmatpush3.msra.mxu1 %v133_v63 }
  0xa7   :  { %537 = vmatmul.mubr.msk.f32.vlgmr.msra.gmra.mrb[0].mxu1 %vm154_vm0, %v141_v1 }
  0xa8   :  { %v129_v3 = vpop.permute.xlu0 %128 }
  0xa9   :  { %v135_v6 = vsel %vm134_vm8, %v129_v3, %v131_v0 }
  0xaa   :  { %178 = vmatpush1.msra.mxu0 %v135_v6 }
  0xab   :  { %503 = vmatmul.mubr.msk.f32.vlgmr.msra.gmra.mrb[0].mxu0 %vm154_vm0, %v756_v4 }
  0xac   :  { %231 = vmatprep.mubr.f32.mxu0 %v695_v5 }
  0xaf   :  { %504 = vmatmul.mubr.msk.f32.gmra.mrb[2].mxu0 %vm154_vm0, %v141_v1 }
  0xb5   :  { %v152_v7 = vpop.permute.xlu1 %151 }
  0xb9   :  { %v147_v23 = vpop.permute.xlu0 %146 }
 0x17a   :  { %v538_v8 = vpop.f32.mrb[0].mxu1 }
 0x17b   :  { %v310_v9 = vadd.f32 %v538_v8, %v152_v7  ;;  %v304_v10 = vpop.f32.mrb[1].mxu1 }
 0x17c   :  { %v305_v24 = vadd.f32 %v304_v10, %v147_v23 }
 0x17d   :  { %v324_v11 = vsub.f32 0.0, %v310_v9 }
 0x17e   :  { %v227_v12 = vpop.f32.mrb[0].mxu0  ;;  %v318_v28 = vmul.f32 0.2, %v305_v24  ;;  %vm315_vm9 = vcmp.gt.f32.partialorder %v305_v24, 0.0 }
 0x17f   :  { %v329_v13 = vmul.f32 1.442695, %v324_v11  ;;  %v229_v14 = vpop.f32.mrb[1].mxu0  ;;  %v228_v32 = vadd.f32 %v227_v12, %v147_v23 }
 0x180   :  { %v321_v33 = vsel %vm315_vm9, %v305_v24, %v318_v28  ;;  %v230_v35 = vadd.f32 %v229_v14, %v147_v23 }
 0x181   :  { %623 = vpow2.f32 %v329_v13  ;;  %v316_v39 = vmul.f32 0.2, %v228_v32  ;;  %vm313_vm10 = vcmp.gt.f32.partialorder %v228_v32, 0.0 }
 0x182   :  { %v233_v15 = vpop.f32.mrb[2].mxu0  ;;  %v317_v40 = vmul.f32 0.2, %v230_v35  ;;  %vm314_vm11 = vcmp.gt.f32.partialorder %v230_v35, 0.0 }
 0x183   :  { %v234_v16 = vadd.f32 %v233_v15, %v152_v7  ;;  %v235_v17 = vpop.f32.mrb[3].mxu0  ;;  %v319_v46 = vsel %vm313_vm10, %v228_v32, %v316_v39 }
 0x184   :  { %v236_v18 = vadd.f32 %v235_v17, %v152_v7  ;;  %v320_v48 = vsel %vm314_vm11, %v230_v35, %v317_v40 }
 0x185   :  { %v322_v19 = vsub.f32 0.0, %v234_v16 }
 0x186   :  { %v323_v20 = vsub.f32 0.0, %v236_v18 }
 0x187   :  { %v325_v4 = vmul.f32 1.442695, %v322_v19 }
 0x188   :  { %v327_v21 = vmul.f32 1.442695, %v323_v20 }
 0x189   :  { %625 = vpow2.f32 %v325_v4 }
 0x18a   :  { %627 = vpow2.f32 %v327_v21 }
 0x18b   :  { %v624_v5 = vpop.eup %623 }
 0x18c   :  { %v333_v22 = vadd.f32 1.0, %v624_v5 }
 0x18e   :  { %629 = vrcp.f32 %v333_v22 }
 0x193   :  { %v626_v25 = vpop.eup %625 }
 0x194   :  { %v628_v26 = vpop.eup %627  ;;  %v331_v27 = vadd.f32 1.0, %v626_v25 }
 0x195   :  { %v332_v30 = vadd.f32 1.0, %v628_v26 }
 0x196   :  { %631 = vrcp.f32 %v331_v27 }
 0x197   :  { %633 = vrcp.f32 %v332_v30 }
 0x198   :  { %v630_v31 = vpop.eup %629 }
 0x199   :  { %v778_v36 = vmul.f32 %v630_v31, %v321_v33 }
 0x19b   :  { %v794_v54 = vcombine.high %v778_v36, %v778_v36  ;;  %v370_v58 = vmul.f32 %v788_v52, %v778_v36 }
 0x19d   :  { %v372_v59 = vmul.f32 %v788_v52, %v794_v54  ;;  %v384_v8 = vsel %vm383_vm13, %v370_v58, 0.0  ;;  %v399_v12 = vmul.f32 %v370_v58, %v370_v58 }
 0x19f   :  { %v391_v10 = vsel %vm383_vm13, %v372_v59, 0.0  ;;  %v401_v11 = vmul.f32 %v372_v59, %v372_v59  ;;  %v411_v5 = vsel %vm383_vm13, %v399_v12, 0.0 }
 0x1a0   :  { %v632_v45 = vpop.eup %631 }
 0x1a1   :  { %v634_v47 = vpop.eup %633  ;;  %v340_v49 = vmul.f32 %v632_v45, %v319_v46  ;;  %v418_v21 = vsel %vm383_vm13, %v401_v11, 0.0  ;;  %v435_v45 = vld [vmem:[%s853_s4] sm:$0xf]  ;;  %s494_s4 = sshll.u32 %s699_s3, 4  ;;  %s495_s4 = int_to_ptr.vmem [resolvable:$true] %s494_s4 }
 0x1a2   :  { %v341_v50 = vmul.f32 %v634_v47, %v320_v48  ;;  %v698_v48 = vmov 839922192   ;;  %s659_s7 = scalar_lea.vmem %s495_s4, 384  ;;  %p664_p9 = scmp.lt.s32.totalorder %s495_s4, %s495_s4 }
 0x1a3   :  { %p660_p8 = scmp.ne.s32.totalorder %s495_s4, %s659_s7  ;;  %p665_p10 = scmp.lt.s32.totalorder %s659_s7, %s659_s7 }
 0x1a4   :  { %v790_v53 = vcombine.high %v340_v49, %v341_v50  ;;  %v796_v55 = vcombine.low %v340_v49, %v341_v50  ;;  %v443_v49 = vunpack.c.l.s4 %v698_v48 }
 0x1a5   :  { %p666_p11 = por %p665_p10, %p664_p9 }
 0x1a6   :  { %v371_v56 = vmul.f32 %v786_v51, %v790_v53  ;;  %v369_v57 = vmul.f32 %v786_v51, %v796_v55  ;;  %v444_v50 = vunpack.c.0.s8 %v443_v49 }
 0x1a7   :  { %p667_p12 = pnand %p666_p11, %p660_p8 }
 0x1a8   :  { %v376_v60 = vcombine.high %v371_v56, %v371_v56  ;;  %v375_v61 = vcombine.high %v369_v57, %v369_v57  ;;  %v400_v62 = vmul.f32 %v371_v56, %v371_v56  ;;  %v398_v63 = vmul.f32 %v369_v57, %v369_v57 }
 0x1a9   :  { %v388_v0 = vsel %vm379_vm12, %v371_v56, 0.0  ;;  %v380_v2 = vsel %vm379_vm12, %v369_v57, 0.0  ;;  %v447_v56 = vsub.s32 %v444_v50, %v776_v34 }
 0x1aa   :  { %v389_v1 = vsel %vm379_vm12, %v376_v60, 0.0  ;;  %v381_v3 = vsel %vm379_vm12, %v375_v61, 0.0  ;;  %v405_v9 = vcombine.high %v400_v62, %v400_v62  ;;  %v404_v13 = vcombine.high %v398_v63, %v398_v63 }
 0x1ab   :  { %v390_v6 = vadd.f32 %v389_v1, %v388_v0  ;;  %v382_v7 = vadd.f32 %v381_v3, %v380_v2  ;;  %v415_v16 = vsel %vm379_vm12, %v400_v62, 0.0  ;;  %v408_v19 = vsel %vm379_vm12, %v398_v63, 0.0 }
 0x1ac   :  { %v416_v17 = vsel %vm379_vm12, %v405_v9, 0.0  ;;  %v409_v20 = vsel %vm379_vm12, %v404_v13, 0.0 }
 0x1ad   :  { %v392_v14 = vadd.f32 %v391_v10, %v390_v6  ;;  %v385_v15 = vadd.f32 %v384_v8, %v382_v7  ;;  %v417_v18 = vadd.f32 %v416_v17, %v415_v16  ;;  %v410_v4 = vadd.f32 %v409_v20, %v408_v19 }
 0x1af   :  { %393 = vadd.xlane.f32.xlu0 %v392_v14  ;;  %386 = vadd.xlane.f32.xlu1 %v385_v15  ;;  %v419_v22 = vadd.f32 %v418_v21, %v417_v18  ;;  %v412_v23 = vadd.f32 %v411_v5, %v410_v4 }
 0x1b3   :  { %420 = vadd.xlane.f32.xlu0 %v419_v22  ;;  %413 = vadd.xlane.f32.xlu1 %v412_v23 }
 0x23c   :  { %v394_v24 = vpop.xlane.xlu0 %393  ;;  %v387_v25 = vpop.xlane.xlu1 %386 }
 0x23d   :  { %v396_v26 = vsel %vm379_vm12, %v394_v24, 0.0  ;;  %v395_v27 = vsel %vm379_vm12, %v387_v25, 0.0 }
 0x23e   :  { %v397_v28 = vadd.f32 %v396_v26, %v395_v27 }
 0x240   :  { %v426_v29 = vmul.f32 0.001953125, %v397_v28  ;;  %v421_v30 = vpop.xlane.xlu0 %420  ;;  %v414_v31 = vpop.xlane.xlu1 %413 }
 0x241   :  { %v423_v32 = vsel %vm379_vm12, %v421_v30, 0.0  ;;  %v422_v33 = vsel %vm379_vm12, %v414_v31, 0.0 }
 0x242   :  { %v424_v35 = vadd.f32 %v423_v32, %v422_v33  ;;  %v428_v37 = vmul.f32 %v426_v29, %v426_v29 }
 0x244   :  { %v427_v38 = vmul.f32 0.001953125, %v424_v35 }
 0x246   :  { %v429_v39 = vsub.f32 %v427_v38, %v428_v37 }
 0x248   :  { %v430_v40 = vmax.f32 %v429_v39, 0.0 }
 0x24a   :  { %v432_v41 = vadd.f32 1e-05, %v430_v40 }
 0x24c   :  { %635 = vrsqrt.f32 %v432_v41 }
 0x256   :  { %v636_v43 = vpop.eup %635 }
 0x257   :  { %v434_v44 = vmul.f32 %v636_v43, %v431_v42 }
 0x259   :  { %440 = vperm.xlu1 %621, %v434_v44   ;;  %v436_v46 = vmul.f32 %v434_v44, %v426_v29 }
 0x25b   :  { %v437_v47 = vsub.f32 %v435_v45, %v436_v46 }
 0x25d   :  { %456 = vperm.xlu0 %622, %v437_v47  }
 0x2d8   :  { %v441_v57 = vpop.permute.xlu1 %440 }
 0x2d9   :  { %v448_v58 = vrot.slane %v441_v57, %v447_v56 }
 0x2db   :  { %v450_v59 = vmul.f32 %v448_v58, %v796_v55  ;;  %v451_v61 = vmul.f32 %v448_v58, %v778_v36  ;;  %v452_v62 = vmul.f32 %v448_v58, %v790_v53  ;;  %v453_v63 = vmul.f32 %v448_v58, %v794_v54 }
 0x2dc   :  { %v457_v60 = vpop.permute.xlu0 %456 }
 0x2dd   :  { %v464_v0 = vrot.slane %v457_v60, %v447_v56 }
 0x2df   :  { %v466_v1 = vadd.f32 %v464_v0, %v450_v59  ;;  %v467_v2 = vadd.f32 %v464_v0, %v451_v61  ;;  %v468_v3 = vadd.f32 %v464_v0, %v452_v62  ;;  %v469_v6 = vadd.f32 %v464_v0, %v453_v63 }
 0x2e1   :  { %v471_v34 = vmul.f32 %v467_v2, %v788_v52  ;;  %v473_v7 = vmul.f32 %v469_v6, %v788_v52  ;;  %v470_v55 = vmul.f32 %v466_v1, %v786_v51  ;;  %v472_v8 = vmul.f32 %v468_v3, %v786_v51 }
 0x2e3   :  { %v478_v36 = vcombine.low %v470_v55, %v472_v8  ;;  %v479_v53 = vcombine.high %v470_v55, %v472_v8  ;;  %v480_v9 = vcombine.low %v471_v34, %v473_v7 }
 0x2e5   :  { %484 = vst [vmem:[#allocation5] sm:$0xff] %v478_v36  ;;  %485 = vst [vmem:[#allocation5 + $0x8] sm:$0xff] %v479_v53 }
 0x2e6   :  { %487 = vst.msk [vmem:[#allocation5 + $0x10] sm:$0xff] %vm486_vm14, %v480_v9 }
 0x2e7   :  { %670 = shalt.err (!%p667_p12)
}
 0x2e8   :  { %s671_s10 = scalar_lea.hbm %s855_s6, 384 }
 0x2e9   :  { %p672_p13 = scmp.ne.s32.totalorder %s855_s6, %s671_s10  ;;  %p675_p0 = scmp.lt.u32.totalorder %s671_s10, %s855_s6 }
 0x2eb   :  { %p677_p1 = pnand %p675_p0, %p672_p13 }
 0x2ed   :  { %680 = shalt.err (!%p677_p1)
}
 0x2ee   :  { %497 = dma.vmem_to_hbm [thread:$0]  %s495_s4, 384, %s855_s6, [#allocation4]  }
 0x2ef   :  { %683 = dma.done.wait [#allocation4], 384  }
 0x2f0   :  { %684 = vsyncadd [#allocation4], 4294966912 }
 0x2f1   :  { %501 = vsyncpa [#allocation3], 1 }
 0x2f2   :  { %502 = vsyncpa [#allocation4], 1 }

</bundles_post_ra>
